<compile_context>
chip_gen: v5e
topology: v5e:2x2
jax: 0.10.0
libtpu: 0.0.40
codegen_flags: <defaults>
</compile_context>

<pallas_src>
import jax
import jax.numpy as jnp
from jax.experimental import pallas as pl
from jax.experimental.pallas import tpu as pltpu

BN_EPS = 1e-5


def bnlnn1_kernel(xt_ref, w_ref, gamma_ref, beta_ref, out_ref):
    # xt_ref:    (IN, B)  flattened input, transposed (batch on the lane axis)
    # w_ref:     (IN, 1)  linear_1.weight as a column vector
    # gamma_ref: (1, 1)   bn_1.weight
    # beta_ref:  (1, 1)   bn_1.bias
    # out_ref:   (1, B)   logits, lane-dense

    # linear_1 on the VPU: per-row broadcast multiply + sublane reduce.
    # (MXU would use K=IN of 128/256 contraction lanes -> pure overhead here.)
    h = jnp.sum(xt_ref[...] * w_ref[...], axis=0, keepdims=True)   # (1, B) f32

    # BatchNorm1d(1, track_running_stats=False): batch statistics, biased
    # variance, eps inside the rsqrt (matches PyTorch train & eval behavior).
    mean = jnp.mean(h, axis=1, keepdims=True)                       # (1, 1)
    centered = h - mean
    var = jnp.mean(centered * centered, axis=1, keepdims=True)      # (1, 1)

    # Fold BN normalization + affine into a single scalar scale/shift.
    scale = gamma_ref[...] * jax.lax.rsqrt(var + BN_EPS)            # (1, 1)
    out_ref[...] = (centered * scale + beta_ref[...]).astype(out_ref.dtype)


def bnlnn1_forward(x, w1, gamma, beta):
    """x: (B, ...) float32; w1: (1, IN) = linear_1.weight; gamma/beta: (1,) = bn_1 affine."""
    x = x.reshape(x.shape[0], -1)          # nn.Flatten
    B, IN = x.shape

    xt = jnp.transpose(x)                  # (IN, B): batch on the lane axis
    w_col = w1.reshape(IN, 1)              # (IN, 1)
    g2d = gamma.reshape(1, 1)
    b2d = beta.reshape(1, 1)

    out_row = pl.pallas_call(
        bnlnn1_kernel,
        out_shape=jax.ShapeDtypeStruct((1, B), jnp.float32),
        grid=(1,),
        in_specs=[
            pl.BlockSpec((IN, B), lambda i: (0, 0)),
            pl.BlockSpec((IN, 1), lambda i: (0, 0)),
            pl.BlockSpec((1, 1), lambda i: (0, 0)),
            pl.BlockSpec((1, 1), lambda i: (0, 0)),
        ],
        out_specs=pl.BlockSpec((1, B), lambda i: (0, 0)),
        compiler_params=pltpu.CompilerParams(
            dimension_semantics=("arbitrary",)),
    )(xt, w_col, g2d, b2d)

    return out_row.reshape(B, 1)           # back to PyTorch's (B, 1) logits


def bnlnn1_reference(x, w1, gamma, beta):
    x = x.reshape(x.shape[0], -1)
    h = x @ w1.T                                            # (B, 1)
    mean = h.mean(axis=0, keepdims=True)
    var = ((h - mean) ** 2).mean(axis=0, keepdims=True)     # biased variance
    h = (h - mean) / jnp.sqrt(var + BN_EPS)
    return h * gamma.reshape(1, 1) + beta.reshape(1, 1)


if __name__ == "__main__":
    key = jax.random.PRNGKey(0)
    k_x, k_w1, k_g, k_b = jax.random.split(key, 4)

    batch = 8
    input_size = 2

    x = jax.random.normal(k_x, (batch, input_size), dtype=jnp.float32)

    # Parameter shapes match the nn.Module definitions.
    w1 = jax.random.normal(k_w1, (1, input_size), dtype=jnp.float32) * 0.5       # linear_1.weight
    gamma = 1.0 + 0.1 * jax.random.normal(k_g, (1,), dtype=jnp.float32)           # bn_1.weight
    beta = 0.1 * jax.random.normal(k_b, (1,), dtype=jnp.float32)                  # bn_1.bias

    out = bnlnn1_forward(x, w1, gamma, beta)
    out = jax.block_until_ready(out)

    ref = bnlnn1_reference(x, w1, gamma, beta)
    assert out.shape == (batch, 1)
    assert jnp.allclose(out, ref, atol=1e-4, rtol=1e-4)

    print("KERNEL_OK")
</pallas_src>

<mosaic_0001>
module attributes {stable_mosaic.version = 11 : i64} {
  func.func @bnlnn1_kernel(%arg0: i32, %arg1: memref<2x8xf32, #tpu.memory_space<vmem>>, %arg2: memref<2x1xf32, #tpu.memory_space<vmem>>, %arg3: memref<1x1xf32, #tpu.memory_space<vmem>>, %arg4: memref<1x1xf32, #tpu.memory_space<vmem>>, %arg5: memref<1x8xf32, #tpu.memory_space<vmem>>) attributes {dimension_semantics = [#tpu.dimension_semantics<arbitrary>], iteration_bounds = array<i64: 1>, scalar_prefetch = 0 : i64, scratch_operands = 0 : i64, tpu.core_type = #tpu.core_type<tc>, window_params = [{pipeline_mode = #tpu.pipeline_mode<synchronous>, transform_indices = @transform_0, window_bounds = array<i64: 2, 8>}, {pipeline_mode = #tpu.pipeline_mode<synchronous>, transform_indices = @transform_1, window_bounds = array<i64: 2, 1>}, {pipeline_mode = #tpu.pipeline_mode<synchronous>, transform_indices = @transform_2, window_bounds = array<i64: 1, 1>}, {pipeline_mode = #tpu.pipeline_mode<synchronous>, transform_indices = @transform_3, window_bounds = array<i64: 1, 1>}, {pipeline_mode = #tpu.pipeline_mode<synchronous>, transform_indices = @transform_4, window_bounds = array<i64: 1, 8>}]} {
    %c0 = arith.constant 0 : index
    %c0_0 = arith.constant 0 : index
    %0 = vector.load %arg1[%c0, %c0_0] : memref<2x8xf32, #tpu.memory_space<vmem>>, vector<2x8xf32>
    %c0_1 = arith.constant 0 : index
    %c0_2 = arith.constant 0 : index
    %1 = vector.load %arg2[%c0_1, %c0_2] : memref<2x1xf32, #tpu.memory_space<vmem>>, vector<2x1xf32>
    %2 = vector.broadcast %1 : vector<2x1xf32> to vector<2x8xf32>
    %3 = arith.mulf %0, %2 : vector<2x8xf32>
    %cst = arith.constant dense<0.000000e+00> : vector<8xf32>
    %4 = vector.multi_reduction <add>, %3, %cst [0] : vector<2x8xf32> to vector<8xf32>
    %5 = vector.shape_cast %4 : vector<8xf32> to vector<1x8xf32>
    %cst_3 = arith.constant dense<0.000000e+00> : vector<1xf32>
    %6 = vector.multi_reduction <add>, %5, %cst_3 [1] : vector<1x8xf32> to vector<1xf32>
    %7 = vector.shape_cast %6 : vector<1xf32> to vector<1x1xf32>
    %cst_4 = arith.constant 8.000000e+00 : f32
    %8 = vector.broadcast %cst_4 : f32 to vector<1x1xf32>
    %9 = arith.divf %7, %8 : vector<1x1xf32>
    %10 = vector.broadcast %9 : vector<1x1xf32> to vector<1x8xf32>
    %11 = arith.subf %5, %10 : vector<1x8xf32>
    %12 = arith.mulf %11, %11 : vector<1x8xf32>
    %cst_5 = arith.constant dense<0.000000e+00> : vector<1xf32>
    %13 = vector.multi_reduction <add>, %12, %cst_5 [1] : vector<1x8xf32> to vector<1xf32>
    %14 = vector.shape_cast %13 : vector<1xf32> to vector<1x1xf32>
    %cst_6 = arith.constant 8.000000e+00 : f32
    %15 = vector.broadcast %cst_6 : f32 to vector<1x1xf32>
    %16 = arith.divf %14, %15 : vector<1x1xf32>
    %c0_7 = arith.constant 0 : index
    %c0_8 = arith.constant 0 : index
    %17 = vector.load %arg3[%c0_7, %c0_8] : memref<1x1xf32, #tpu.memory_space<vmem>>, vector<1x1xf32>
    %cst_9 = arith.constant 9.99999974E-6 : f32
    %18 = vector.broadcast %cst_9 : f32 to vector<1x1xf32>
    %19 = arith.addf %16, %18 : vector<1x1xf32>
    %20 = math.rsqrt %19 : vector<1x1xf32>
    %21 = arith.mulf %17, %20 : vector<1x1xf32>
    %22 = vector.broadcast %21 : vector<1x1xf32> to vector<1x8xf32>
    %23 = arith.mulf %11, %22 : vector<1x8xf32>
    %c0_10 = arith.constant 0 : index
    %c0_11 = arith.constant 0 : index
    %24 = vector.load %arg4[%c0_10, %c0_11] : memref<1x1xf32, #tpu.memory_space<vmem>>, vector<1x1xf32>
    %25 = vector.broadcast %24 : vector<1x1xf32> to vector<1x8xf32>
    %26 = arith.addf %23, %25 : vector<1x8xf32>
    %c0_12 = arith.constant 0 : index
    %c0_13 = arith.constant 0 : index
    %27 = vector.load %arg5[%c0_12, %c0_13] : memref<1x8xf32, #tpu.memory_space<vmem>>, vector<1x8xf32>
    tpu.vector_store %arg5[%c0_12, %c0_13], %26 {strides = array<i32>} : memref<1x8xf32, #tpu.memory_space<vmem>>, vector<1x8xf32>,
    return
  }
  func.func @transform_0(%arg0: i32) -> (i32, i32) {
    %c0_i32 = arith.constant 0 : i32
    %c0_i32_0 = arith.constant 0 : i32
    %c0_i32_1 = arith.constant 0 : i32
    return %c0_i32, %c0_i32_0 : i32, i32
  }
  func.func @transform_1(%arg0: i32) -> (i32, i32) {
    %c0_i32 = arith.constant 0 : i32
    %c0_i32_0 = arith.constant 0 : i32
    %c0_i32_1 = arith.constant 0 : i32
    return %c0_i32, %c0_i32_0 : i32, i32
  }
  func.func @transform_2(%arg0: i32) -> (i32, i32) {
    %c0_i32 = arith.constant 0 : i32
    %c0_i32_0 = arith.constant 0 : i32
    %c0_i32_1 = arith.constant 0 : i32
    return %c0_i32, %c0_i32_0 : i32, i32
  }
  func.func @transform_3(%arg0: i32) -> (i32, i32) {
    %c0_i32 = arith.constant 0 : i32
    %c0_i32_0 = arith.constant 0 : i32
    %c0_i32_1 = arith.constant 0 : i32
    return %c0_i32, %c0_i32_0 : i32, i32
  }
  func.func @transform_4(%arg0: i32) -> (i32, i32) {
    %c0_i32 = arith.constant 0 : i32
    %c0_i32_0 = arith.constant 0 : i32
    %c0_i32_1 = arith.constant 0 : i32
    return %c0_i32, %c0_i32_0 : i32, i32
  }
}

</mosaic_0001>

<bundles_post_ra>
// kernel: tpu_custom_call.1
= control target key start
LH: loop header
LB: loop body
LE: loop exit
PB: predicated region body
PF: predicated region fallthrough
CT: control target
= control target key end

     0   :  { %s183_s0 = inlined_call_operand.vmem [shape: f32[2,8], index: 0, kind: input, shape index: {}]   ;;  %s184_s1 = inlined_call_operand.vmem [shape: f32[2,1], index: 1, kind: input, shape index: {}]   ;;  %s185_s2 = inlined_call_operand.<no memory space> [shape: f32[1,1], index: 2, kind: input, shape index: {}]   ;;  %s186_s4 = inlined_call_operand.hbm [shape: f32[1,8], index: 4, kind: output, shape index: {}]   ;;  %s187_s3 = inlined_call_operand.<no memory space> [shape: f32[1,1], index: 3, kind: input, shape index: {}]  }
   0x1   :  { %v9_v0 = vstv %s185_s2  ;;  %v11_v1 = vstv %s187_s3 }
   0x2   :  { %10 = vst [vmem:[#allocation2] sm:$0x1] %v9_v0 }
   0x3   :  { %12 = vst [vmem:[#allocation3] sm:$0x1] %v11_v1 }
   0x4   :  { %v23_v2 = vld [vmem:[%s184_s1] sm:$0x3] }
   0x5   :  { %13 = vsyncpa [#allocation5], 0  ;;  %v138_v3 = vmov 0   ;;  %v22_v4 = vld [vmem:[%s183_s0] sm:$0x3]  ;;  %vm30_vm0 = vcmask 58368  }
   0x6   :  { %105 = vset.pattern.permute.xlu0 %v138_v3  ;;  %106 = vset.pattern.permute.xlu1 %v138_v3  ;;  %vm38_vm1 = vcmask 64512   ;;  %v139_v15 = vmov 8.0   ;;  %s140_s0 = smov [#allocation4]   ;;  %s93_s23 = sshll.u32 %s186_s4, 4  ;;  %vm84_vm6 = vcmask 57344   ;;  %s94_s23 = int_to_ptr.hbm [resolvable:$true] %s93_s23 }
   0x7   :  { %26 = vperm.xlu0 %105, %v23_v2   ;;  %107 = vset.pattern.permute.xlu2 %v138_v3  ;;  %108 = vrcp.f32 %v139_v15  ;;  %s91_s1 = sshll.u32 %s140_s0, 4  ;;  %s92_s1 = int_to_ptr.vmem [resolvable:$true] %s91_s1 }
   0x9   :  { %v56_v36 = vld [vmem:[#allocation2] sm:$0x1] }
   0xa   :  { %v76_v27 = vld [vmem:[#allocation3] sm:$0x1] }
   0xb   :  { %79 = vperm.xlu2 %107, %v76_v27  }
   0xd   :  { %v109_v16 = vpop.eup %108 }
   0xe   :  { %v43_v17 = vmul.f32 8.0, %v109_v16  ;;  %vm47_vm2 = vweird.f32 %v109_v16 }
  0x10   :  { %v44_v18 = vsub.f32 1.0, %v43_v17 }
  0x12   :  { %v45_v19 = vmul.f32 %v109_v16, %v44_v18 }
  0x14   :  { %v46_v20 = vadd.f32 %v109_v16, %v45_v19 }
  0x16   :  { %v48_v21 = vsel %vm47_vm2, %v109_v16, %v46_v20 }
  0x65   :  { %v80_v40 = vpop.permute.xlu2 %79 }
  0x66   :  { %v82_v43 = vperm.slane %v80_v40, 0 }
  0x79   :  { %v27_v5 = vpop.permute.xlu0 %26 }
  0x7a   :  { %v29_v6 = vmul.f32 %v27_v5, %v22_v4 }
  0x7c   :  { %v31_v7 = vsel %vm30_vm0, %v29_v6, 0.0 }
  0x7d   :  { %v32_v8 = vrot.slane %v31_v7, 4 }
  0x7f   :  { %v33_v9 = vadd.f32 %v32_v8, %v31_v7 }
  0x81   :  { %v34_v10 = vrot.slane %v33_v9, 2 }
  0x83   :  { %v35_v11 = vadd.f32 %v34_v10, %v33_v9 }
  0x85   :  { %v36_v12 = vrot.slane %v35_v11, 1 }
  0x87   :  { %v37_v13 = vadd.f32 %v36_v12, %v35_v11 }
  0x89   :  { %v39_v14 = vsel %vm38_vm1, %v37_v13, 0.0 }
  0x8a   :  { %40 = vadd.xlane.f32.xlu0 %v39_v14 }
  0xfd   :  { %v41_v22 = vpop.xlane.xlu0 %40 }
  0xfe   :  { %v49_v23 = vmul.f32 %v48_v21, %v41_v22 }
 0x100   :  { %v50_v24 = vsub.f32 %v37_v13, %v49_v23 }
 0x102   :  { %v51_v25 = vmul.f32 %v50_v24, %v50_v24 }
 0x104   :  { %v52_v26 = vsel %vm38_vm1, %v51_v25, 0.0 }
 0x105   :  { %53 = vadd.xlane.f32.xlu1 %v52_v26 }
 0x178   :  { %v54_v28 = vpop.xlane.xlu1 %53 }
 0x179   :  { %v55_v29 = vmul.f32 %v54_v28, %v48_v21 }
 0x17b   :  { %v57_v30 = vadd.f32 1e-05, %v55_v29 }
 0x17d   :  { %110 = vrsqrt.f32 %v57_v30  ;;  %vm64_vm4 = vweird.f32 %v57_v30 }
 0x183   :  { %v111_v31 = vpop.eup %110 }
 0x184   :  { %v59_v32 = vmul.f32 %v111_v31, %v57_v30  ;;  %vm65_vm3 = vweird.f32 %v111_v31 }
 0x185   :  { %vm66_vm5 = vmor %vm64_vm4, %vm65_vm3 }
 0x186   :  { %v60_v33 = vmul.f32 %v111_v31, %v59_v32 }
 0x188   :  { %v61_v34 = vmul.f32 0.5, %v60_v33 }
 0x18a   :  { %v62_v35 = vsub.f32 1.5, %v61_v34 }
 0x18c   :  { %v63_v37 = vmul.f32 %v111_v31, %v62_v35 }
 0x18e   :  { %v67_v38 = vsel %vm66_vm5, %v111_v31, %v63_v37 }
 0x18f   :  { %v68_v39 = vmul.f32 %v67_v38, %v56_v36 }
 0x191   :  { %71 = vperm.xlu1 %106, %v68_v39  }
 0x203   :  { %v72_v41 = vpop.permute.xlu1 %71 }
 0x204   :  { %v74_v42 = vperm.slane %v72_v41, 0 }
 0x206   :  { %v75_v44 = vmul.f32 %v74_v42, %v50_v24 }
 0x208   :  { %v83_v45 = vadd.f32 %v82_v43, %v75_v44 }
 0x20a   :  { %85 = vst.msk [vmem:[#allocation4] sm:$0x1] %vm84_vm6, %v83_v45 }
 0x20b   :  { %96 = dma.vmem_to_hbm [thread:$0]  %s92_s1, 16, %s94_s23, [#allocation5]  }
 0x20c   :  { %136 = dma.done.wait [#allocation5], 16  }
 0x20d   :  { %137 = vsyncadd [#allocation5], 4294967280 }
 0x20e   :  { %101 = vsyncpa [#allocation5], 1 }

</bundles_post_ra>
